<compile_context>
chip_gen: v5e
topology: v5e:2x2
jax: 0.10.0
libtpu: 0.0.40
codegen_flags: <defaults>
</compile_context>

<pallas_src>
import jax
import jax.numpy as jnp
from jax.experimental import pallas as pl
from jax.experimental.pallas import tpu as pltpu


def _round_up(n, m):
    return ((n + m - 1) // m) * m


def dqn_kernel(x_ref, w1_ref, b1_ref, w2_ref, b2_ref, w3_ref, b3_ref, o_ref):
    # Cast x to the MXU compute dtype in VMEM (free VPU work; avoids a separate
    # wrapper-side convert pass over x when the caller holds f32 inputs).
    x = x_ref[...].astype(w1_ref.dtype)
    # fc1 + ReLU: MXU dot with f32 accumulation; bias add / ReLU in f32 (VPU).
    h = jnp.dot(x, w1_ref[...], preferred_element_type=jnp.float32)
    h = jnp.maximum(h + b1_ref[...], 0.0).astype(w2_ref.dtype)
    # fc2 + ReLU
    h = jnp.dot(h, w2_ref[...], preferred_element_type=jnp.float32)
    h = jnp.maximum(h + b2_ref[...], 0.0).astype(w3_ref.dtype)
    # fc3: unpadded head; the (tb, out_size) store is masked but its HBM
    # writeback is exactly out_size columns (no pad bytes, no post-slice).
    h = jnp.dot(h, w3_ref[...], preferred_element_type=jnp.float32)
    o_ref[...] = (h + b3_ref[...]).astype(o_ref.dtype)


def _choose_batch_tile(B, block_b):
    # Multiple of 16 keeps (sublane, lane) tiling legal for f32 and bf16 blocks.
    tb = min(block_b, _round_up(B, 16))
    tb = max(16, _round_up(tb, 16))
    # v7x megacore: ensure >= 2 grid steps when the batch allows it so the
    # "parallel" batch axis can be sharded over both TensorCores.
    if pl.cdiv(B, tb) < 2 and B > 16:
        tb = max(16, _round_up(pl.cdiv(B, 2), 16))
    return tb


def dqn_forward(x, params, *, block_b=2048, compute_dtype=jnp.bfloat16,
                vmem_limit_bytes=None):
    """Fused 3-layer MLP forward with a pipelined batch grid.

    compute_dtype: dtype fed to the MXU (weights are cast once; x is cast
    in-kernel). Default bf16 (MXU-native on v5e/v6e/v7x); accumulation and the
    bias/ReLU epilogue stay f32. Pass jnp.float32 (or None) for full f32.

    block_b: batch rows per grid step. 2048 keeps per-step DMA well above the
    fixed per-step overhead while double-buffered x/out tiles stay a few MiB,
    under even v5e's 16 MiB default scoped VMEM. For block_b >= 4096 in f32 on
    v5e, pass vmem_limit_bytes (e.g. 48 << 20).
    """
    w1, b1, w2, b2, w3, b3 = params
    out_dtype = x.dtype
    B, in_size = x.shape
    h1, h2 = w1.shape[1], w2.shape[1]
    out_size = w3.shape[1]

    # One-time (tiny) weight casts; biases stay f32 for the f32 epilogue.
    if compute_dtype is not None:
        w1 = w1.astype(compute_dtype)
        w2 = w2.astype(compute_dtype)
        w3 = w3.astype(compute_dtype)

    tb = _choose_batch_tile(B, block_b)
    # No host-side batch pad: Pallas handles the ragged last block (OOB rows
    # compute on garbage input, their output writes are dropped).
    grid = (pl.cdiv(B, tb),)

    out = pl.pallas_call(
        dqn_kernel,
        out_shape=jax.ShapeDtypeStruct((B, out_size), out_dtype),
        grid=grid,
        in_specs=[
            pl.BlockSpec((tb, in_size), lambda i: (i, 0)),    # x: streamed per step
            pl.BlockSpec((in_size, h1), lambda i: (0, 0)),    # w1: VMEM-resident
            pl.BlockSpec((1, h1), lambda i: (0, 0)),          # b1: VMEM-resident
            pl.BlockSpec((h1, h2), lambda i: (0, 0)),         # w2: VMEM-resident
            pl.BlockSpec((1, h2), lambda i: (0, 0)),          # b2: VMEM-resident
            pl.BlockSpec((h2, out_size), lambda i: (0, 0)),   # w3: VMEM-resident
            pl.BlockSpec((1, out_size), lambda i: (0, 0)),    # b3: VMEM-resident
        ],
        out_specs=pl.BlockSpec((tb, out_size), lambda i: (i, 0)),
        compiler_params=pltpu.CompilerParams(
            dimension_semantics=("parallel",),  # v7x: batch sharded over 2 TCs
            vmem_limit_bytes=vmem_limit_bytes,
        ),
    )(x, w1, b1, w2, b2, w3, b3)

    return out


def init_dqn_params(key, input_size, output_size, dtype=jnp.float32):
    """Deterministic init mimicking PyTorch nn.Linear default:
    U(-1/sqrt(fan_in), 1/sqrt(fan_in)) for both weight and bias.
    Weights stored as (in_features, out_features)."""
    dims = [(input_size, 64), (64, 32), (32, output_size)]
    params = []
    for fan_in, fan_out in dims:
        kw, kb, key = jax.random.split(key, 3)
        bound = 1.0 / (fan_in ** 0.5)
        w = jax.random.uniform(kw, (fan_in, fan_out), dtype, -bound, bound)
        b = jax.random.uniform(kb, (1, fan_out), dtype, -bound, bound)
        params.extend([w, b])
    return tuple(params)


def dqn_reference(x, params):
    w1, b1, w2, b2, w3, b3 = params
    h = jnp.maximum(x @ w1 + b1, 0.0)
    h = jnp.maximum(h @ w2 + b2, 0.0)
    return h @ w3 + b3


if __name__ == "__main__":
    key = jax.random.PRNGKey(0)
    k_x, k_x2, k_p = jax.random.split(key, 3)

    input_size = 16
    output_size = 4
    params = init_dqn_params(k_p, input_size, output_size)

    # --- small single-block case (B=8), full f32 compute, tight check.
    # Tolerance 1e-4: jnp.dot on f32 may use bf16 MXU passes under default
    # precision, so bit-exact agreement with the XLA reference isn't guaranteed.
    x = jax.random.normal(k_x, (8, input_size), dtype=jnp.float32)
    out = jax.block_until_ready(dqn_forward(x, params, compute_dtype=jnp.float32))
    ref = dqn_reference(x, params)
    assert out.shape == (8, output_size)
    assert jnp.allclose(out, ref, atol=1e-4, rtol=1e-4), "f32 mismatch vs reference"

    # --- multi-step grid with a ragged last block (B=40, block_b=16 -> 3 steps,
    # last block only 8 valid rows; no host-side batch pad).
    x2 = jax.random.normal(k_x2, (40, input_size), dtype=jnp.float32)
    out2 = jax.block_until_ready(
        dqn_forward(x2, params, block_b=16, compute_dtype=jnp.float32))
    ref2 = dqn_reference(x2, params)
    assert out2.shape == (40, output_size)
    assert jnp.allclose(out2, ref2, atol=1e-4, rtol=1e-4), "gridded f32 mismatch"

    # --- default path: bf16 MXU compute (f32 accumulation), default block_b.
    # B=40 -> tb clamped to 32 so the grid has 2 steps (both v7x TCs busy).
    out_bf16 = jax.block_until_ready(dqn_forward(x2, params))
    assert out_bf16.shape == (40, output_size)
    assert jnp.allclose(out_bf16, ref2, atol=5e-2, rtol=5e-2), "bf16 mismatch"

    print("KERNEL_OK")
</pallas_src>

<mosaic_0001>
module attributes {stable_mosaic.version = 11 : i64} {
  func.func @dqn_kernel(%arg0: i32, %arg1: memref<16x16xf32, #tpu.memory_space<vmem>>, %arg2: memref<16x64xf32, #tpu.memory_space<vmem>>, %arg3: memref<1x64xf32, #tpu.memory_space<vmem>>, %arg4: memref<64x32xf32, #tpu.memory_space<vmem>>, %arg5: memref<1x32xf32, #tpu.memory_space<vmem>>, %arg6: memref<32x4xf32, #tpu.memory_space<vmem>>, %arg7: memref<1x4xf32, #tpu.memory_space<vmem>>, %arg8: memref<16x4xf32, #tpu.memory_space<vmem>>) attributes {dimension_semantics = [#tpu.dimension_semantics<parallel>], iteration_bounds = array<i64: 1>, scalar_prefetch = 0 : i64, scratch_operands = 0 : i64, tpu.core_type = #tpu.core_type<tc>, window_params = [{transform_indices = @transform_0, window_bounds = array<i64: 16, 16>}, {pipeline_mode = #tpu.pipeline_mode<synchronous>, transform_indices = @transform_1, window_bounds = array<i64: 16, 64>}, {pipeline_mode = #tpu.pipeline_mode<synchronous>, transform_indices = @transform_2, window_bounds = array<i64: 1, 64>}, {pipeline_mode = #tpu.pipeline_mode<synchronous>, transform_indices = @transform_3, window_bounds = array<i64: 64, 32>}, {pipeline_mode = #tpu.pipeline_mode<synchronous>, transform_indices = @transform_4, window_bounds = array<i64: 1, 32>}, {pipeline_mode = #tpu.pipeline_mode<synchronous>, transform_indices = @transform_5, window_bounds = array<i64: 32, 4>}, {pipeline_mode = #tpu.pipeline_mode<synchronous>, transform_indices = @transform_6, window_bounds = array<i64: 1, 4>}, {transform_indices = @transform_7, window_bounds = array<i64: 16, 4>}]} {
    %c0 = arith.constant 0 : index
    %c0_0 = arith.constant 0 : index
    %0 = vector.load %arg1[%c0, %c0_0] : memref<16x16xf32, #tpu.memory_space<vmem>>, vector<16x16xf32>
    %c0_1 = arith.constant 0 : index
    %c0_2 = arith.constant 0 : index
    %1 = vector.load %arg2[%c0_1, %c0_2] : memref<16x64xf32, #tpu.memory_space<vmem>>, vector<16x64xf32>
    %cst = arith.constant dense<0.000000e+00> : vector<16x64xf32>
    %2 = tpu.matmul %0, %1, %cst {dimension_numbers = #tpu.dot_dimension_numbers<[1], [0], [0], [1], [0, 0, 1, 1], [], []>} : vector<16x16xf32>, vector<16x64xf32>, vector<16x64xf32> -> vector<16x64xf32>
    %c0_3 = arith.constant 0 : index
    %c0_4 = arith.constant 0 : index
    %3 = vector.load %arg3[%c0_3, %c0_4] : memref<1x64xf32, #tpu.memory_space<vmem>>, vector<1x64xf32>
    %4 = vector.broadcast %3 : vector<1x64xf32> to vector<16x64xf32>
    %5 = arith.addf %2, %4 : vector<16x64xf32>
    %cst_5 = arith.constant 0.000000e+00 : f32
    %6 = vector.broadcast %cst_5 : f32 to vector<16x64xf32>
    %7 = arith.maximumf %5, %6 : vector<16x64xf32>
    %c0_6 = arith.constant 0 : index
    %c0_7 = arith.constant 0 : index
    %8 = vector.load %arg4[%c0_6, %c0_7] : memref<64x32xf32, #tpu.memory_space<vmem>>, vector<64x32xf32>
    %cst_8 = arith.constant dense<0.000000e+00> : vector<16x32xf32>
    %9 = tpu.matmul %7, %8, %cst_8 {dimension_numbers = #tpu.dot_dimension_numbers<[1], [0], [0], [1], [0, 0, 1, 1], [], []>} : vector<16x64xf32>, vector<64x32xf32>, vector<16x32xf32> -> vector<16x32xf32>
    %c0_9 = arith.constant 0 : index
    %c0_10 = arith.constant 0 : index
    %10 = vector.load %arg5[%c0_9, %c0_10] : memref<1x32xf32, #tpu.memory_space<vmem>>, vector<1x32xf32>
    %11 = vector.broadcast %10 : vector<1x32xf32> to vector<16x32xf32>
    %12 = arith.addf %9, %11 : vector<16x32xf32>
    %cst_11 = arith.constant 0.000000e+00 : f32
    %13 = vector.broadcast %cst_11 : f32 to vector<16x32xf32>
    %14 = arith.maximumf %12, %13 : vector<16x32xf32>
    %c0_12 = arith.constant 0 : index
    %c0_13 = arith.constant 0 : index
    %15 = vector.load %arg6[%c0_12, %c0_13] : memref<32x4xf32, #tpu.memory_space<vmem>>, vector<32x4xf32>
    %cst_14 = arith.constant dense<0.000000e+00> : vector<16x4xf32>
    %16 = tpu.matmul %14, %15, %cst_14 {dimension_numbers = #tpu.dot_dimension_numbers<[1], [0], [0], [1], [0, 0, 1, 1], [], []>} : vector<16x32xf32>, vector<32x4xf32>, vector<16x4xf32> -> vector<16x4xf32>
    %c0_15 = arith.constant 0 : index
    %c0_16 = arith.constant 0 : index
    %17 = vector.load %arg7[%c0_15, %c0_16] : memref<1x4xf32, #tpu.memory_space<vmem>>, vector<1x4xf32>
    %18 = vector.broadcast %17 : vector<1x4xf32> to vector<16x4xf32>
    %19 = arith.addf %16, %18 : vector<16x4xf32>
    %c0_17 = arith.constant 0 : index
    %c0_18 = arith.constant 0 : index
    %20 = vector.load %arg8[%c0_17, %c0_18] : memref<16x4xf32, #tpu.memory_space<vmem>>, vector<16x4xf32>
    tpu.vector_store %arg8[%c0_17, %c0_18], %19 {strides = array<i32>} : memref<16x4xf32, #tpu.memory_space<vmem>>, vector<16x4xf32>,
    return
  }
  func.func @transform_0(%arg0: i32) -> (i32, i32) {
    %c0_i32 = arith.constant 0 : i32
    %c0_i32_0 = arith.constant 0 : i32
    return %arg0, %c0_i32 : i32, i32
  }
  func.func @transform_1(%arg0: i32) -> (i32, i32) {
    %c0_i32 = arith.constant 0 : i32
    %c0_i32_0 = arith.constant 0 : i32
    %c0_i32_1 = arith.constant 0 : i32
    return %c0_i32, %c0_i32_0 : i32, i32
  }
  func.func @transform_2(%arg0: i32) -> (i32, i32) {
    %c0_i32 = arith.constant 0 : i32
    %c0_i32_0 = arith.constant 0 : i32
    %c0_i32_1 = arith.constant 0 : i32
    return %c0_i32, %c0_i32_0 : i32, i32
  }
  func.func @transform_3(%arg0: i32) -> (i32, i32) {
    %c0_i32 = arith.constant 0 : i32
    %c0_i32_0 = arith.constant 0 : i32
    %c0_i32_1 = arith.constant 0 : i32
    return %c0_i32, %c0_i32_0 : i32, i32
  }
  func.func @transform_4(%arg0: i32) -> (i32, i32) {
    %c0_i32 = arith.constant 0 : i32
    %c0_i32_0 = arith.constant 0 : i32
    %c0_i32_1 = arith.constant 0 : i32
    return %c0_i32, %c0_i32_0 : i32, i32
  }
  func.func @transform_5(%arg0: i32) -> (i32, i32) {
    %c0_i32 = arith.constant 0 : i32
    %c0_i32_0 = arith.constant 0 : i32
    %c0_i32_1 = arith.constant 0 : i32
    return %c0_i32, %c0_i32_0 : i32, i32
  }
  func.func @transform_6(%arg0: i32) -> (i32, i32) {
    %c0_i32 = arith.constant 0 : i32
    %c0_i32_0 = arith.constant 0 : i32
    %c0_i32_1 = arith.constant 0 : i32
    return %c0_i32, %c0_i32_0 : i32, i32
  }
  func.func @transform_7(%arg0: i32) -> (i32, i32) {
    %c0_i32 = arith.constant 0 : i32
    %c0_i32_0 = arith.constant 0 : i32
    return %arg0, %c0_i32 : i32, i32
  }
}

</mosaic_0001>

<bundles_post_ra>
// kernel: tpu_custom_call.1
= control target key start
LH: loop header
LB: loop body
LE: loop exit
PB: predicated region body
PF: predicated region fallthrough
CT: control target
= control target key end

     0   :  { %vm34_vm0 = vcmask 130048   ;;  %vm78_vm1 = vcmask 523264   ;;  %vm118_vm2 = vcmask 261120   ;;  %vm148_vm3 = vcmask 31744   ;;  %s311_s0 = inlined_call_operand.vmem [shape: f32[8,16], index: 0, kind: input, shape index: {}]   ;;  %s312_s1 = inlined_call_operand.vmem [shape: f32[16,64], index: 1, kind: input, shape index: {}]   ;;  %s313_s2 = inlined_call_operand.vmem [shape: f32[1,64], index: 2, kind: input, shape index: {}]   ;;  %s314_s3 = inlined_call_operand.vmem [shape: f32[64,32], index: 3, kind: input, shape index: {}]   ;;  %s315_s4 = inlined_call_operand.vmem [shape: f32[1,32], index: 4, kind: input, shape index: {}]   ;;  %s316_s5 = inlined_call_operand.vmem [shape: f32[32,4], index: 5, kind: input, shape index: {}]   ;;  %s317_s6 = inlined_call_operand.vmem [shape: f32[1,4], index: 6, kind: input, shape index: {}]   ;;  %s318_s7 = inlined_call_operand.vmem [shape: f32[8,4], index: 7, kind: output, shape index: {}]  }
   0x1   :  { %v29_v0 = vld [vmem:[%s312_s1 + $0x8] sm:$0xff]  ;;  %v28_v1 = vld [vmem:[%s312_s1] sm:$0xff]  ;;  %v73_v3 = vld [vmem:[%s314_s3 + $0x38] sm:$0xff] }
   0x2   :  { %55 = vmatpush.msra.mxu0 %v29_v0  ;;  %v26_v2 = vld [vmem:[%s311_s0] sm:$0xff]  ;;  %v72_v4 = vld [vmem:[%s314_s3 + $0x30] sm:$0xff]  ;;  %93 = vmatpush.msra.mxu1 %v73_v3  ;;  %v71_v5 = vld [vmem:[%s314_s3 + $0x28] sm:$0xff] }
   0x3   :  { %198 = vmatpush.msra.mxu3 %v73_v3  ;;  %v70_v6 = vld [vmem:[%s314_s3 + $0x20] sm:$0xff]  ;;  %v69_v7 = vld [vmem:[%s314_s3 + $0x18] sm:$0xff]  ;;  %v27_v8 = vld [vmem:[%s311_s0 + $0x8] sm:$0xff] }
   0x4   :  { %56 = vmatpush.msra.mxu0 %v28_v1  ;;  %94 = vmatpush.msra.mxu1 %v72_v4  ;;  %v68_v9 = vld [vmem:[%s314_s3 + $0x10] sm:$0xff]  ;;  %v67_v10 = vld [vmem:[%s314_s3 + $0x8] sm:$0xff]  ;;  %v66_v11 = vld [vmem:[%s314_s3] sm:$0xff] }
   0x5   :  { %192 = vmatmul.msk.f32.vlgmr.msra.gmra.mxu0 %vm34_vm0, %v26_v2  ;;  %199 = vmatpush.msra.mxu3 %v72_v4  ;;  %v113_v12 = vld [vmem:[%s316_s5 + $0x18] sm:$0xff]  ;;  %v206_v13 = vld [vmem:[%s313_s2] ss:$0 sm:$0xff]  ;;  %v112_v20 = vld [vmem:[%s316_s5 + $0x10] sm:$0xff] }
   0x6   :  { %95 = vmatpush.msra.mxu1 %v71_v5  ;;  %137 = vmatpush.msra.mxu2 %v113_v12  ;;  %v111_v21 = vld [vmem:[%s316_s5 + $0x8] sm:$0xff]  ;;  %v110_v22 = vld [vmem:[%s316_s5] sm:$0xff] }
   0x7   :  { %200 = vmatpush.msra.mxu3 %v71_v5  ;;  %v207_v23 = vld [vmem:[%s315_s4] ss:$0 sm:$0xff] }
   0x8   :  { %96 = vmatpush.msra.mxu1 %v70_v6  ;;  %138 = vmatpush.msra.mxu2 %v112_v20  ;;  %v208_v30 = vld [vmem:[%s317_s6] ss:$0 sm:$0xff] }
   0x9   :  { %201 = vmatpush.msra.mxu3 %v70_v6 }
   0xa   :  { %97 = vmatpush.msra.mxu1 %v69_v7  ;;  %139 = vmatpush.msra.mxu2 %v111_v21 }
   0xb   :  { %202 = vmatpush.msra.mxu3 %v69_v7 }
   0xc   :  { %98 = vmatpush.msra.mxu1 %v68_v9  ;;  %140 = vmatpush.msra.mxu2 %v110_v22 }
   0xd   :  { %193 = vmatmul.msk.f32.gmra.mxu0 %vm34_vm0, %v27_v8  ;;  %203 = vmatpush.msra.mxu3 %v68_v9 }
   0xe   :  { %99 = vmatpush.msra.mxu1 %v67_v10 }
   0xf   :  { %204 = vmatpush.msra.mxu3 %v67_v10 }
  0x10   :  { %100 = vmatpush.msra.mxu1 %v66_v11 }
  0x11   :  { %205 = vmatpush.msra.mxu3 %v66_v11 }
  0x82   :  { %v58_v14 = vpop.f32.mrf.mxu0 }
  0x83   :  { %v59_v15 = vadd.f32 %v206_v13, %v58_v14 }
  0x85   :  { %v64_v16 = vmax.f32 %v59_v15, 0.0 }
  0x87   :  { %194 = vmatmul.msk.f32.vlgmr.msra.gmra.mxu1 %vm78_vm1, %v64_v16 }
  0x8a   :  { %v61_v17 = vpop.f32.mrf.mxu0 }
  0x8b   :  { %v62_v18 = vadd.f32 %v206_v13, %v61_v17 }
  0x8d   :  { %v65_v19 = vmax.f32 %v62_v18, 0.0 }
  0x8f   :  { %195 = vmatmul.msk.f32.vlgmr.msra.gmra.mxu3 %vm78_vm1, %v65_v19 }
 0x104   :  { %v102_v24 = vpop.f32.mrf.mxu1 }
 0x105   :  { %v103_v25 = vadd.f32 %v207_v23, %v102_v24 }
 0x107   :  { %v108_v26 = vmax.f32 %v103_v25, 0.0 }
 0x109   :  { %196 = vmatmul.msk.f32.vlgmr.msra.gmra.mxu2 %vm118_vm2, %v108_v26 }
 0x112   :  { %v105_v27 = vpop.f32.mrf.mxu3 }
 0x113   :  { %v106_v28 = vadd.f32 %v207_v23, %v105_v27 }
 0x115   :  { %v109_v29 = vmax.f32 %v106_v28, 0.0 }
 0x117   :  { %197 = vmatmul.msk.f32.gmra.mxu2 %vm118_vm2, %v109_v29 }
 0x18c   :  { %v142_v31 = vpop.f32.mrf.mxu2 }
 0x18d   :  { %v143_v32 = vadd.f32 %v208_v30, %v142_v31 }
 0x18f   :  { %149 = vst.msk [vmem:[#allocation2] sm:$0xff] %vm148_vm3, %v143_v32 }
 0x196   :  { %v181_v33 = vld [vmem:[#allocation2] sm:$0xff] }
 0x197   :  { %182 = vst [vmem:[%s318_s7] sm:$0xff] %v181_v33 }
 0x19a   :  { %v145_v34 = vpop.f32.mrf.mxu2 }

</bundles_post_ra>
